<compile_context>
chip_gen: v5e
topology: v5e:2x2
jax: 0.10.0
libtpu: 0.0.40
codegen_flags: <defaults>
</compile_context>

<pallas_src>
import functools

import jax
import jax.numpy as jnp
from jax import lax
from jax.experimental import pallas as pl
from jax.experimental.pallas import tpu as pltpu


def _round_up(x, m):
    return ((x + m - 1) // m) * m


def _pick_divisor(n, candidates, min_tiles=1):
    for c in candidates:
        if n % c == 0 and n // c >= min_tiles:
            return c
    return n


def _pad_reorder_gate_cols(w, h, hp):
    """Reorder PyTorch LSTM gate blocks (i,f,g,o)->(i,f,o,g), zero-pad each to hp."""
    lead = w.shape[:-1]
    w4 = w.reshape(lead + (4, h))
    w4 = w4[..., (0, 1, 3, 2), :]          # sigmoid gates first, tanh gate last
    if hp != h:
        pad = [(0, 0)] * len(lead) + [(0, 0), (0, hp - h)]
        w4 = jnp.pad(w4, pad)
    return w4.reshape(lead + (4 * hp,))


# ---------------------------------------------------------------------------
# Kernel A: tiled (M, K) x (K, N) + bias, 2-D "parallel" grid (megacore-shardable)
# ---------------------------------------------------------------------------
def _matmul_bias_kernel(x_ref, w_ref, b_ref, out_ref):
    out_ref[...] = (
        jnp.dot(x_ref[...], w_ref[...], preferred_element_type=jnp.float32)
        + b_ref[...]).astype(out_ref.dtype)


def matmul_bias_pallas(x, w, b):
    m, k = x.shape
    n = w.shape[1]
    tm = _pick_divisor(m, (512, 256, 128, 64, 32, 16, 8))
    # >= 2 N tiles whenever N >= 256 so both v7x TensorCores get work.
    tn = _pick_divisor(n, (512, 256, 128), min_tiles=2 if n >= 256 else 1)
    buf_bytes = 2 * 4 * (tm * k + k * tn + tn + tm * tn)   # double-buffered tiles
    grid_spec = pltpu.PrefetchScalarGridSpec(
        num_scalar_prefetch=0,
        grid=(m // tm, n // tn),
        in_specs=[
            pl.BlockSpec((tm, k), lambda i, j: (i, 0)),
            pl.BlockSpec((k, tn), lambda i, j: (0, j)),
            pl.BlockSpec((1, tn), lambda i, j: (0, j)),
        ],
        out_specs=pl.BlockSpec((tm, tn), lambda i, j: (i, j)),
    )
    return pl.pallas_call(
        _matmul_bias_kernel,
        out_shape=jax.ShapeDtypeStruct((m, n), jnp.float32),
        grid_spec=grid_spec,
        compiler_params=pltpu.CompilerParams(
            dimension_semantics=("parallel", "parallel"),
            vmem_limit_bytes=min(max(2 * buf_bytes, 16 << 20), 100 << 20)),
    )(x, w, b)


# ---------------------------------------------------------------------------
# Kernel B: sequential LSTM recurrence (single invocation, streamed gx)
# ---------------------------------------------------------------------------
def _lstm_recurrence_kernel(gx_hbm, whh_hbm, h_out_hbm,
                            whh_vmem, hbuf, gbuf, sem, *, seq_len):
    """gx_hbm: (T, Bp, 4Hp) HBM, whh_hbm: (Hp, 4Hp) HBM, h_out_hbm: (T, Bp, Hp) HBM.
    whh_vmem: (Hp, 4Hp) VMEM, hbuf: (T, Bp, Hp) VMEM, gbuf: (2, Bp, 4Hp) VMEM,
    sem: DMA semaphores (4,): [0..1]=gx double buffer, [2]=W_hh, [3]=writeback."""
    bp = gbuf.shape[1]
    hp = whh_vmem.shape[0]

    # Bring W_hh resident in VMEM once (single-buffered; grid has one point)
    # and prefetch the step-0 gate pre-activations while it loads.
    w_cp = pltpu.make_async_copy(whh_hbm, whh_vmem, sem.at[2])
    w_cp.start()
    pltpu.make_async_copy(gx_hbm.at[0], gbuf.at[0], sem.at[0]).start()
    w_cp.wait()

    h0 = jnp.zeros((bp, hp), jnp.float32)
    c0 = jnp.zeros((bp, hp), jnp.float32)

    def step(t, carry):
        h, c = carry
        slot = t & 1
        pltpu.make_async_copy(gx_hbm.at[t], gbuf.at[slot], sem.at[slot]).wait()

        @pl.when(t + 1 < seq_len)
        def _():
            pltpu.make_async_copy(gx_hbm.at[t + 1], gbuf.at[1 - slot],
                                  sem.at[1 - slot]).start()

        # TODO(synk): holding W_hh in the MXU across the loop via
        # pltpu.matmul_push_rhs/acc_lhs/pop is a further v6e/v7x option.
        gates = gbuf[slot] + jnp.dot(h, whh_vmem[...],
                                     preferred_element_type=jnp.float32)
        # Gate layout after wrapper reorder: [i, f, o, g] -> one wide sigmoid.
        sig = jax.nn.sigmoid(gates[:, :3 * hp])
        i_g = sig[:, 0 * hp:1 * hp]
        f_g = sig[:, 1 * hp:2 * hp]
        o_g = sig[:, 2 * hp:3 * hp]
        g_g = jnp.tanh(gates[:, 3 * hp:])
        c_new = f_g * c + i_g * g_g
        h_new = o_g * jnp.tanh(c_new)
        hbuf[t] = h_new                      # full (8,128)-tile store (Bp padded)
        return (h_new, c_new)

    # Modest unroll: LLO visibility without blowing vreg pressure at large H.
    lax.fori_loop(0, seq_len, step, (h0, c0), unroll=min(seq_len, 4))

    # One big lane-dense writeback of all hidden states.
    out_cp = pltpu.make_async_copy(hbuf, h_out_hbm, sem.at[3])
    out_cp.start()
    out_cp.wait()


def lstm_recurrence_pallas(gx, w_hh, *, batch, seq_len, hidden):
    hp = hidden
    kernel = functools.partial(_lstm_recurrence_kernel, seq_len=seq_len)
    scratch_bytes = 4 * (hp * 4 * hp + seq_len * batch * hp + 2 * batch * 4 * hp)
    grid_spec = pltpu.PrefetchScalarGridSpec(
        num_scalar_prefetch=0,
        grid=(1,),  # single grid point: whole recurrence in one invocation
        in_specs=[
            pl.BlockSpec(memory_space=pl.ANY),   # gx (T, Bp, 4Hp): streamed
            pl.BlockSpec(memory_space=pl.ANY),   # W_hh (Hp, 4Hp): copied once
        ],
        out_specs=pl.BlockSpec(memory_space=pl.ANY),  # h (T, Bp, Hp): one DMA
        scratch_shapes=[
            pltpu.VMEM((hp, 4 * hp), jnp.float32),          # resident W_hh
            pltpu.VMEM((seq_len, batch, hp), jnp.float32),  # all h_t
            pltpu.VMEM((2, batch, 4 * hp), jnp.float32),    # gx double buffer
            pltpu.SemaphoreType.DMA((4,)),
        ],
    )
    return pl.pallas_call(
        kernel,
        out_shape=jax.ShapeDtypeStruct((seq_len, batch, hp), jnp.float32),
        grid_spec=grid_spec,
        compiler_params=pltpu.CompilerParams(
            dimension_semantics=("arbitrary",),
            vmem_limit_bytes=min(scratch_bytes + (16 << 20), 100 << 20)),
    )(gx, w_hh)


# ---------------------------------------------------------------------------
# Forward pass (mirrors DecoderRNN.forward; inference-mode dropout = identity)
# ---------------------------------------------------------------------------
def decoder_rnn_forward(params, features, captions):
    """features: (B, E) f32, captions: (B, T_cap) int32 -> (B, T_cap, V) f32."""
    captions = captions[:, :-1]
    embed = jnp.take(params["embedding"], captions, axis=0)      # (B, T-1, E)
    # TODO(synk): training-mode nn.Dropout(0.5) not reproduced (torch RNG);
    #             inference-mode dropout is identity.
    x = jnp.concatenate([features[:, None, :], embed], axis=1)   # (B, T, E)
    b, t, e = x.shape
    h = params["w_hh_t"].shape[0]
    v = params["w_out_t"].shape[1]
    bp = _round_up(b, 8)                                          # sublane pad
    ep, hp, vp = _round_up(e, 128), _round_up(h, 128), _round_up(v, 128)

    # Pad + reorder params so gate slices are 128-lane aligned and the three
    # sigmoid gates are contiguous.  Everything stays f32 for exact parity.
    w_ih = _pad_reorder_gate_cols(params["w_ih_t"], h, hp)        # (E, 4Hp)
    w_ih = jnp.pad(w_ih, ((0, ep - e), (0, 0)))                   # (Ep, 4Hp)
    w_hh = _pad_reorder_gate_cols(params["w_hh_t"], h, hp)        # (H, 4Hp)
    w_hh = jnp.pad(w_hh, ((0, hp - h), (0, 0)))                   # (Hp, 4Hp)
    bias = _pad_reorder_gate_cols(params["bias"], h, hp)          # (1, 4Hp)
    w_out = jnp.pad(params["w_out_t"], ((0, hp - h), (0, vp - v)))  # (Hp, Vp)
    b_out = jnp.pad(params["b_out"], ((0, 0), (0, vp - v)))         # (1, Vp)

    # Time-major, batch padded to a sublane multiple, embed padded to lanes.
    x_tbe = jnp.transpose(x, (1, 0, 2)).astype(jnp.float32)       # (T, B, E)
    x_tbe = jnp.pad(x_tbe, ((0, 0), (0, bp - b), (0, ep - e)))    # (T, Bp, Ep)
    x2d = x_tbe.reshape(t * bp, ep)

    # Input contribution to the gates for ALL steps: one big parallel matmul.
    gx = matmul_bias_pallas(x2d, w_ih, bias)                      # (T*Bp, 4Hp)
    gx = gx.reshape(t, bp, 4 * hp)

    # Sequential LSTM recurrence (only the unavoidable h @ W_hh per step).
    h_all = lstm_recurrence_pallas(gx, w_hh, batch=bp, seq_len=t, hidden=hp)
    h2d = h_all.reshape(t * bp, hp)

    # Output projection (FLOP-dominant, fully parallel over t and batch).
    logits = matmul_bias_pallas(h2d, w_out, b_out)                # (T*Bp, Vp)
    logits = logits.reshape(t, bp, vp)[:, :b, :v]
    return jnp.transpose(logits, (1, 0, 2))                       # (B, T, V)


# ---------------------------------------------------------------------------
# Pure-JAX reference (lax.scan LSTM) for correctness checking
# ---------------------------------------------------------------------------
def decoder_rnn_reference(params, features, captions):
    captions = captions[:, :-1]
    embed = jnp.take(params["embedding"], captions, axis=0)
    x = jnp.concatenate([features[:, None, :], embed], axis=1)
    x_tbe = jnp.transpose(x, (1, 0, 2)).astype(jnp.float32)

    b = features.shape[0]
    h_dim = params["w_hh_t"].shape[0]

    def step(carry, x_t):
        h, c = carry
        gates = x_t @ params["w_ih_t"] + h @ params["w_hh_t"] + params["bias"][0]
        i = jax.nn.sigmoid(gates[:, 0 * h_dim:1 * h_dim])
        f = jax.nn.sigmoid(gates[:, 1 * h_dim:2 * h_dim])
        g = jnp.tanh(gates[:, 2 * h_dim:3 * h_dim])
        o = jax.nn.sigmoid(gates[:, 3 * h_dim:4 * h_dim])
        c = f * c + i * g
        h = o * jnp.tanh(c)
        out = h @ params["w_out_t"] + params["b_out"][0]
        return (h, c), out

    init = (jnp.zeros((b, h_dim), jnp.float32),
            jnp.zeros((b, h_dim), jnp.float32))
    _, outs = jax.lax.scan(step, init, x_tbe)
    return jnp.transpose(outs, (1, 0, 2))


def init_params(key, vocab_size, embed_size, hidden_size):
    """Deterministic synthetic init with PyTorch-like shapes (pre-transposed)."""
    h, e, v = hidden_size, embed_size, vocab_size
    ks = jax.random.split(key, 7)
    s = 1.0 / jnp.sqrt(h)
    return {
        "embedding": jax.random.normal(ks[0], (v, e), jnp.float32),
        "w_ih_t": jax.random.uniform(ks[1], (e, 4 * h), jnp.float32, -s, s),
        "w_hh_t": jax.random.uniform(ks[2], (h, 4 * h), jnp.float32, -s, s),
        "bias": (jax.random.uniform(ks[3], (1, 4 * h), jnp.float32, -s, s)
                 + jax.random.uniform(ks[4], (1, 4 * h), jnp.float32, -s, s)),
        "w_out_t": jax.random.uniform(ks[5], (h, v), jnp.float32, -s, s),
        "b_out": jax.random.uniform(ks[6], (1, v), jnp.float32, -s, s),
    }


if __name__ == "__main__":
    # Small shapes consistent with the module.  (For real deployments, batch
    # more sequences together — at B=2 the recurrence is pure latency.)
    B = 2           # batch
    E = 32          # embed_size
    H = 32          # hidden_size
    V = 64          # vocab_size
    T_CAP = 8       # caption length (sequence length = T_CAP)

    key = jax.random.PRNGKey(0)
    k_par, k_feat, k_cap = jax.random.split(key, 3)

    params = init_params(k_par, V, E, H)
    features = jax.random.normal(k_feat, (B, E), jnp.float32)
    captions = jax.random.randint(k_cap, (B, T_CAP), 0, V, jnp.int32)

    out = decoder_rnn_forward(params, features, captions)
    out = jax.block_until_ready(out)

    ref = jax.block_until_ready(decoder_rnn_reference(params, features, captions))
    assert out.shape == (B, T_CAP, V), out.shape
    assert jnp.allclose(out, ref, atol=1e-4, rtol=1e-4), float(
        jnp.max(jnp.abs(out - ref)))

    print("KERNEL_OK")
</pallas_src>

<mosaic_0001>
module attributes {stable_mosaic.version = 11 : i64} {
  func.func @_matmul_bias_kernel(%arg0: i32, %arg1: i32, %arg2: memref<64x128xf32, #tpu.memory_space<vmem>>, %arg3: memref<128x256xf32, #tpu.memory_space<vmem>>, %arg4: memref<1x256xf32, #tpu.memory_space<vmem>>, %arg5: memref<64x256xf32, #tpu.memory_space<vmem>>) attributes {dimension_semantics = [#tpu.dimension_semantics<parallel>, #tpu.dimension_semantics<parallel>], iteration_bounds = array<i64: 1, 2>, scalar_prefetch = 0 : i64, scratch_operands = 0 : i64, tpu.core_type = #tpu.core_type<tc>, window_params = [{transform_indices = @transform_0, window_bounds = array<i64: 64, 128>}, {transform_indices = @transform_1, window_bounds = array<i64: 128, 256>}, {transform_indices = @transform_2, window_bounds = array<i64: 1, 256>}, {transform_indices = @transform_3, window_bounds = array<i64: 64, 256>}]} {
    %c0 = arith.constant 0 : index
    %c0_0 = arith.constant 0 : index
    %0 = vector.load %arg2[%c0, %c0_0] : memref<64x128xf32, #tpu.memory_space<vmem>>, vector<64x128xf32>
    %c0_1 = arith.constant 0 : index
    %c0_2 = arith.constant 0 : index
    %1 = vector.load %arg3[%c0_1, %c0_2] : memref<128x256xf32, #tpu.memory_space<vmem>>, vector<128x256xf32>
    %cst = arith.constant dense<0.000000e+00> : vector<64x256xf32>
    %2 = tpu.matmul %0, %1, %cst {dimension_numbers = #tpu.dot_dimension_numbers<[1], [0], [0], [1], [0, 0, 1, 1], [], []>} : vector<64x128xf32>, vector<128x256xf32>, vector<64x256xf32> -> vector<64x256xf32>
    %c0_3 = arith.constant 0 : index
    %c0_4 = arith.constant 0 : index
    %3 = vector.load %arg4[%c0_3, %c0_4] : memref<1x256xf32, #tpu.memory_space<vmem>>, vector<1x256xf32>
    %4 = vector.broadcast %3 : vector<1x256xf32> to vector<64x256xf32>
    %5 = arith.addf %2, %4 : vector<64x256xf32>
    %c0_5 = arith.constant 0 : index
    %c0_6 = arith.constant 0 : index
    %6 = vector.load %arg5[%c0_5, %c0_6] : memref<64x256xf32, #tpu.memory_space<vmem>>, vector<64x256xf32>
    tpu.vector_store %arg5[%c0_5, %c0_6], %5 {strides = array<i32>} : memref<64x256xf32, #tpu.memory_space<vmem>>, vector<64x256xf32>,
    return
  }
  func.func @transform_0(%arg0: i32, %arg1: i32) -> (i32, i32) {
    %c0_i32 = arith.constant 0 : i32
    %c0_i32_0 = arith.constant 0 : i32
    return %arg0, %c0_i32 : i32, i32
  }
  func.func @transform_1(%arg0: i32, %arg1: i32) -> (i32, i32) {
    %c0_i32 = arith.constant 0 : i32
    %c0_i32_0 = arith.constant 0 : i32
    return %c0_i32, %arg1 : i32, i32
  }
  func.func @transform_2(%arg0: i32, %arg1: i32) -> (i32, i32) {
    %c0_i32 = arith.constant 0 : i32
    %c0_i32_0 = arith.constant 0 : i32
    return %c0_i32, %arg1 : i32, i32
  }
  func.func @transform_3(%arg0: i32, %arg1: i32) -> (i32, i32) {
    %c0_i32 = arith.constant 0 : i32
    return %arg0, %arg1 : i32, i32
  }
}

</mosaic_0001>

<bundles_post_ra>
// kernel: tpu_custom_call.1
= control target key start
LH: loop header
LB: loop body
LE: loop exit
PB: predicated region body
PF: predicated region fallthrough
CT: control target
= control target key end

     0   :  { %s1126_s0 = inlined_call_operand.hbm [shape: f32[64,128], index: 0, kind: input, shape index: {}]   ;;  %s1127_s1 = inlined_call_operand.hbm [shape: f32[128,512], index: 1, kind: input, shape index: {}]   ;;  %s1128_s2 = inlined_call_operand.hbm [shape: f32[1,512], index: 2, kind: input, shape index: {}]   ;;  %s1129_s3 = inlined_call_operand.hbm [shape: f32[64,512], index: 3, kind: output, shape index: {}]  }
   0x1   :  { %1130 = sst [smem:[#allocation12_spill]] %s1126_s0 }
   0x2   :  { %1131 = sst [smem:[#allocation13_spill]] %s1127_s1 }
   0x3   :  { %8 = vsyncpa [#allocation3], 0 }
   0x4   :  { %9 = vsyncpa [#allocation6], 0 }
   0x5   :  { %11 = vsyncpa [#allocation6 + $0x1], 0 }
   0x6   :  { %12 = vsyncpa [#allocation4], 0 }
   0x7   :  { %14 = vsyncpa [#allocation4 + $0x1], 0  ;;  %s899_s12 = smov 0   ;;  %s901_s13 = smov 0  }
   0x8   :  { %s903_s14 = smov 0   ;;  %s905_s15 = smov 0  }
   0x9   :  { %s907_s16 = smov 0   ;;  %s909_s17 = smov 0  }
   0xa LB: > { %s29_s18 = sadd.s32 1, %s864_s16  ;;  %s65_s19 = sadd.s32 1, %s856_s14  ;;  %s868_s17 = sphi %s909_s17, %s20_s17   ;;  %s864_s16 = sphi %s907_s16, %s1144_s16   ;;  %s860_s15 = sphi %s905_s15, %s1143_s15   ;;  %s856_s14 = sphi %s903_s14, %s1142_s14   ;;  %s852_s13 = sphi %s901_s13, %s1141_s13   ;;  %s848_s12 = sphi %s899_s12, %s1140_s12  }
   0xb   : > { %p30_p0 = scmp.ge.s32.totalorder %s29_s18, 2  ;;  %p72_p1 = scmp.ne.s32.totalorder %s856_s14, %s852_s13 }
   0xc   : > { %p73_p2 = scmp.eq.s32.totalorder %s868_s17, 0  ;;  %p556_p3 = scmp.ge.s32.totalorder %s868_s17, 2 }
   0xd   : > { %s1146_s18 = smov (%p30_p0, %s29_s18), 0  ;;  %p632_p5 = scmp.lt.s32.totalorder %s868_s17, 2 }
   0xe   : > { %p940_p4 = por %p73_p2, %p72_p1  ;;  %s62_s21 = ssub.s32 %s864_s16, %s1146_s18 }
   0xf   : > { %s173_s22 = sand.u32 1, %s868_s17   ;;  %p63_p6 = scmp.eq.s32.totalorder %s62_s21, 0 }
  0x10   : > { %s175_s23 = sand.u32 1, %s856_s14   ;;  %s572_s24 = sshll.u32 %s864_s16, 4 }
  0x11   : > { %s951_s25 = scalar_select %p63_p6, %s856_s14, %s65_s19  }
  0x12   : > { %s557_s26 = sshll.u32 %s175_s23, 8  ;;  %s1133_s1 = sld [smem:[#allocation13_spill]] }
  0x13   : > { %s177_s4 = scalar_lea.vmem [#allocation5], %s557_s26  ;;  %p962_p7 = pnand %p632_p5, %p940_p4 }
  0x14   : > { %s185_s5 = sshll.u32 %s177_s4, 4  ;;  %s966_s7 = scalar_lea.sflag [#allocation6], %s173_s22  ;;  %s186_s5 = int_to_ptr.vmem [resolvable:$true] %s185_s5 }
  0x15   : > { %s870_s8 = smov 512   ;;  %s871_s9 = smov 256  }
  0x16   : > { %s872_s10 = smov 16   ;;  %s972_s11 = sadd.s32 4294967295, %s868_s17  }
  0x17   : > { %s553_s19 = sadd.s32 4294967294, %s868_s17   ;;  %p78_p8 = scmp.ne.s32.totalorder %s852_s13, %s848_s12 }
  0x18   : > { %s182_s29 = scalar_lea.hbm %s1133_s1, %s572_s24  ;;  %p79_p9 = scmp.eq.s32.totalorder %s972_s11, 0 }
  0x19   : > { %s183_s30 = sshll.u32 %s182_s29, 4  ;;  %p130_p10 = scmp.eq.s32.totalorder %s972_s11, 1  ;;  %s184_s30 = int_to_ptr.hbm [resolvable:$true] %s183_s30 }
  0x1a   : > { %623 = dma.hbm_to_vmem [thread:$0]  (!%p962_p7), %s184_s30, 4096, %s186_s5, %s966_s7, %s870_s8, %s871_s9, %s872_s10  }
  0x1b   : > { %p136_p11 = scmp.eq.s32.totalorder %s553_s19, 1  ;;  %p981_p12 = por %p79_p9, %p78_p8 }
  0x1c   : > { %p554_p13 = scmp.ge.s32.totalorder %s868_s17, 1  ;;  %p989_p0 = por %p130_p10, %p72_p1 }
  0x1d   : > { %p993_p2 = por %p136_p11, %p78_p8  ;;  %p143_p4 = scmp.lt.s32.totalorder %s868_s17, 3 }
  0x1e   : > { %s1138_s0 = sld [smem:[#allocation12_spill]]  ;;  %s873_s29 = smov [#allocation2]  }
  0x1f   : > { %p1001_p5 = pnand %p554_p13, %p143_p4  ;;  %s159_s30 = sshll.u32 %s873_s29, 4  ;;  %s160_s30 = int_to_ptr.vmem [resolvable:$true] %s159_s30 }
  0x20   : > { %s560_s4 = sshll.u32 %s175_s23, 1  ;;  %s561_s5 = sshll.u32 %s864_s16, 1 }
  0x21   : > { %p616_p1 = pneg %p1001_p5  ;;  %s199_s8 = scalar_lea.vmem [#allocation7], %s560_s4 }
  0x22   : > { %s207_s9 = sshll.u32 %s199_s8, 4  ;;  %s203_s24 = scalar_lea.hbm %s1128_s2, %s561_s5  ;;  %s208_s9 = int_to_ptr.vmem [resolvable:$true] %s207_s9 }
  0x23   : > { %p617_p6 = pnand %p616_p1, %p79_p9  ;;  %s874_s26 = smov 128  }
  0x24   : > { %s157_s27 = sshll.u32 %s1138_s0, 4  ;;  %s875_s0 = smov 8   ;;  %s158_s27 = int_to_ptr.hbm [resolvable:$true] %s157_s27 }
  0x25   : > { %619 = dma.hbm_to_vmem [thread:$0]  (!%p617_p6), %s158_s27, 1024, %s160_s30, [#allocation3], %s874_s26, %s874_s26, %s875_s0  }
  0x26   : > { %s205_s1 = sshll.u32 %s203_s24, 4  ;;  %216 = sbr.rel (%p1001_p5) target bundleno = 244 (0xf4), region = 32  ;;  %s206_s1 = int_to_ptr.hbm [resolvable:$true] %s205_s1 }
  0x27   : > { %626 = dma.hbm_to_vmem [thread:$0]  (!%p962_p7), %s206_s1, 32, %s208_s9, %s966_s7  }
  0x2b   : > { %835 = dma.done.wait (%p79_p9), [#allocation3], 1024  }
  0x2c   : > { %837 = vsyncadd (%p79_p9), [#allocation3], 4294966272  ;;  %s223_s23 = sand.u32 1, %s972_s11   ;;  %s1026_s29 = sand.u32 1, %s852_s13  }
  0x2d   : > { %s564_s0 = sshll.u32 %s1026_s29, 8  ;;  %s224_s27 = scalar_lea.sflag [#allocation6], %s223_s23 }
  0x2e   : > { %s1029_s6 = scalar_lea.vmem [#allocation5], %s564_s0 }
  0x2f   : > { %839 = dma.done.wait (%p981_p12), %s224_s27, 4128  }
  0x30   : > { %841 = vsyncadd (%p981_p12), %s224_s27, 4294963168  ;;  %v309_v0 = vld [vmem:[%s1029_s6 + $0xf0] sm:$0xff]  ;;  %v310_v1 = vld [vmem:[%s1029_s6 + $0xf8] sm:$0xff]  ;;  %s565_s1 = sshll.u32 %s1026_s29, 1  ;;  %s566_s11 = sshll.u32 %s1026_s29, 7 }
  0x31   : > { %v307_v2 = vld [vmem:[%s1029_s6 + $0xe0] sm:$0xff]  ;;  %574 = vmatpush.msra.mxu2 %v309_v0  ;;  %590 = vmatpush.msra.mxu3 %v310_v1  ;;  %v308_v3 = vld [vmem:[%s1029_s6 + $0xe8] sm:$0xff]  ;;  %v305_v4 = vld [vmem:[%s1029_s6 + $0xd0] sm:$0xff]  ;;  %s237_s7 = scalar_lea.vmem [#allocation7], %s565_s1  ;;  %s1069_s20 = scalar_lea.vmem [#allocation8], %s566_s11 }
  0x32   : > { %v306_v5 = vld [vmem:[%s1029_s6 + $0xd8] sm:$0xff]  ;;  %317 = vmatpush.msra.mxu0 %v309_v0  ;;  %358 = vmatpush.msra.mxu1 %v310_v1  ;;  %v303_v6 = vld [vmem:[%s1029_s6 + $0xc0] sm:$0xff]  ;;  %v304_v7 = vld [vmem:[%s1029_s6 + $0xc8] sm:$0xff]  ;;  %s573_s28 = sshll.u32 %s860_s15, 4  ;;  %s431_s8 = sshll.u32 %s1069_s20, 4  ;;  %s432_s8 = int_to_ptr.vmem [resolvable:$true] %s431_s8 }
  0x33   : > { %575 = vmatpush.msra.mxu2 %v307_v2  ;;  %591 = vmatpush.msra.mxu3 %v308_v3  ;;  %v301_v8 = vld [vmem:[%s1029_s6 + $0xb0] sm:$0xff]  ;;  %v302_v9 = vld [vmem:[%s1029_s6 + $0xb8] sm:$0xff]  ;;  %v299_v10 = vld [vmem:[%s1029_s6 + $0xa0] sm:$0xff]  ;;  %s430_s5 = scalar_lea.hbm %s1129_s3, %s573_s28  ;;  %s416_s15 = scalar_lea.sflag [#allocation4], %s1026_s29 }
  0x34   : > { %318 = vmatpush.msra.mxu0 %v307_v2  ;;  %359 = vmatpush.msra.mxu1 %v308_v3  ;;  %v300_v11 = vld [vmem:[%s1029_s6 + $0xa8] sm:$0xff]  ;;  %v297_v12 = vld [vmem:[%s1029_s6 + $0x90] sm:$0xff]  ;;  %v298_v13 = vld [vmem:[%s1029_s6 + $0x98] sm:$0xff]  ;;  %s433_s9 = sshll.u32 %s430_s5, 4  ;;  %s802_s23 = scalar_lea.hbm %s1129_s3, 256  ;;  %s434_s9 = int_to_ptr.hbm [resolvable:$true] %s433_s9 }
  0x35   : > { %576 = vmatpush.msra.mxu2 %v305_v4  ;;  %592 = vmatpush.msra.mxu3 %v306_v5  ;;  %v295_v14 = vld [vmem:[%s1029_s6 + $0x80] sm:$0xff]  ;;  %v296_v15 = vld [vmem:[%s1029_s6 + $0x88] sm:$0xff]  ;;  %v293_v16 = vld [vmem:[%s1029_s6 + $0x70] sm:$0xff]  ;;  %s796_s10 = sshra.s32 %s434_s9, 4  ;;  %s797_s10 = int_to_ptr.hbm [resolvable:$true] %s796_s10 }
  0x36   : > { %319 = vmatpush.msra.mxu0 %v305_v4  ;;  %360 = vmatpush.msra.mxu1 %v306_v5  ;;  %v294_v17 = vld [vmem:[%s1029_s6 + $0x78] sm:$0xff]  ;;  %v291_v18 = vld [vmem:[%s1029_s6 + $0x60] sm:$0xff]  ;;  %v292_v19 = vld [vmem:[%s1029_s6 + $0x68] sm:$0xff]  ;;  %s798_s19 = scalar_lea.hbm %s797_s10, 128  ;;  %p803_p10 = scmp.lt.s32.totalorder %s797_s10, %s1129_s3 }
  0x37   : > { %577 = vmatpush.msra.mxu2 %v303_v6  ;;  %593 = vmatpush.msra.mxu3 %v304_v7  ;;  %v289_v20 = vld [vmem:[%s1029_s6 + $0x50] sm:$0xff]  ;;  %v290_v21 = vld [vmem:[%s1029_s6 + $0x58] sm:$0xff]  ;;  %v287_v22 = vld [vmem:[%s1029_s6 + $0x40] sm:$0xff]  ;;  %p799_p7 = scmp.ne.s32.totalorder %s797_s10, %s798_s19  ;;  %p804_p11 = scmp.lt.s32.totalorder %s802_s23, %s798_s19 }
  0x38   : > { %320 = vmatpush.msra.mxu0 %v303_v6  ;;  %361 = vmatpush.msra.mxu1 %v304_v7  ;;  %v288_v23 = vld [vmem:[%s1029_s6 + $0x48] sm:$0xff]  ;;  %v285_v24 = vld [vmem:[%s1029_s6 + $0x30] sm:$0xff]  ;;  %v286_v25 = vld [vmem:[%s1029_s6 + $0x38] sm:$0xff] }
  0x39   : > { %578 = vmatpush.msra.mxu2 %v301_v8  ;;  %594 = vmatpush.msra.mxu3 %v302_v9  ;;  %v283_v26 = vld [vmem:[%s1029_s6 + $0x20] sm:$0xff]  ;;  %v284_v27 = vld [vmem:[%s1029_s6 + $0x28] sm:$0xff]  ;;  %v281_v28 = vld [vmem:[%s1029_s6 + $0x10] sm:$0xff]  ;;  %p800_p8 = pnand %p799_p7, %p989_p0  ;;  %p805_p12 = por %p804_p11, %p803_p10 }
  0x3a   : > { %321 = vmatpush.msra.mxu0 %v301_v8  ;;  %362 = vmatpush.msra.mxu1 %v302_v9  ;;  %v282_v29 = vld [vmem:[%s1029_s6 + $0x18] sm:$0xff]  ;;  %v279_v30 = vld [vmem:[%s1029_s6] sm:$0xff]  ;;  %v280_v31 = vld [vmem:[%s1029_s6 + $0x8] sm:$0xff] }
  0x3b   : > { %579 = vmatpush.msra.mxu2 %v299_v10  ;;  %595 = vmatpush.msra.mxu3 %v300_v11  ;;  %v275_v32 = vld [vmem:[#allocation2 + $0x20] sm:$0xff]  ;;  %v276_v34 = vld [vmem:[#allocation2 + $0x28] sm:$0xff]  ;;  %v277_v36 = vld [vmem:[#allocation2 + $0x30] sm:$0xff]  ;;  %p801_p9 = pneg %p800_p8 }
  0x3c   : > { %322 = vmatpush.msra.mxu0 %v299_v10  ;;  %363 = vmatpush.msra.mxu1 %v300_v11  ;;  %v271_v33 = vld [vmem:[#allocation2] sm:$0xff]  ;;  %v272_v35 = vld [vmem:[#allocation2 + $0x8] sm:$0xff]  ;;  %v273_v37 = vld [vmem:[#allocation2 + $0x10] sm:$0xff] }
  0x3d   : > { %580 = vmatpush.msra.mxu2 %v297_v12  ;;  %596 = vmatpush.msra.mxu3 %v298_v13  ;;  %v278_v38 = vld [vmem:[#allocation2 + $0x38] sm:$0xff]  ;;  %v311_v40 = vld [vmem:[%s237_s7] sm:$0x3]  ;;  %p806_p13 = pnand %p805_p12, %p801_p9 }
  0x3e   : > { %323 = vmatpush.msra.mxu0 %v297_v12  ;;  %364 = vmatpush.msra.mxu1 %v298_v13  ;;  %v274_v39 = vld [vmem:[#allocation2 + $0x18] sm:$0xff]  ;;  %v313_v41 = vperm.slane %v311_v40, 0  ;;  %v314_v42 = vperm.slane %v311_v40, 1 }
  0x3f   : > { %581 = vmatpush.msra.mxu2 %v295_v14  ;;  %597 = vmatpush.msra.mxu3 %v296_v15 }
  0x40   : > { %324 = vmatpush.msra.mxu0 %v295_v14  ;;  %365 = vmatpush.msra.mxu1 %v296_v15 }
  0x41   : > { %582 = vmatpush.msra.mxu2 %v293_v16  ;;  %598 = vmatpush.msra.mxu3 %v294_v17 }
  0x42   : > { %325 = vmatpush.msra.mxu0 %v293_v16  ;;  %366 = vmatpush.msra.mxu1 %v294_v17 }
  0x43   : > { %583 = vmatpush.msra.mxu2 %v291_v18  ;;  %599 = vmatpush.msra.mxu3 %v292_v19 }
  0x44   : > { %326 = vmatpush.msra.mxu0 %v291_v18  ;;  %367 = vmatpush.msra.mxu1 %v292_v19 }
  0x45   : > { %584 = vmatpush.msra.mxu2 %v289_v20  ;;  %600 = vmatpush.msra.mxu3 %v290_v21 }
  0x46   : > { %327 = vmatpush.msra.mxu0 %v289_v20  ;;  %368 = vmatpush.msra.mxu1 %v290_v21 }
  0x47   : > { %585 = vmatpush.msra.mxu2 %v287_v22  ;;  %601 = vmatpush.msra.mxu3 %v288_v23 }
  0x48   : > { %328 = vmatpush.msra.mxu0 %v287_v22  ;;  %369 = vmatpush.msra.mxu1 %v288_v23 }
  0x49   : > { %586 = vmatpush.msra.mxu2 %v285_v24  ;;  %602 = vmatpush.msra.mxu3 %v286_v25 }
  0x4a   : > { %329 = vmatpush.msra.mxu0 %v285_v24  ;;  %370 = vmatpush.msra.mxu1 %v286_v25 }
  0x4b   : > { %587 = vmatpush.msra.mxu2 %v283_v26  ;;  %603 = vmatpush.msra.mxu3 %v284_v27 }
  0x4c   : > { %330 = vmatpush.msra.mxu0 %v283_v26  ;;  %371 = vmatpush.msra.mxu1 %v284_v27 }
  0x4d   : > { %588 = vmatpush.msra.mxu2 %v281_v28  ;;  %604 = vmatpush.msra.mxu3 %v282_v29 }
  0x4e   : > { %331 = vmatpush.msra.mxu0 %v281_v28  ;;  %372 = vmatpush.msra.mxu1 %v282_v29 }
  0x4f   : > { %589 = vmatpush.msra.mxu2 %v279_v30  ;;  %605 = vmatpush.msra.mxu3 %v280_v31 }
  0x50   : > { %345 = vmatmul.f32.vlgmr.msra.gmra.mxu2 %v275_v32  ;;  %386 = vmatmul.f32.vlgmr.msra.gmra.mxu3 %v275_v32 }
  0x51   : > { %332 = vmatpush.msra.mxu0 %v279_v30  ;;  %373 = vmatpush.msra.mxu1 %v280_v31 }
  0x52   : > { %333 = vmatmul.f32.vlgmr.msra.gmra.mxu0 %v271_v33  ;;  %374 = vmatmul.f32.vlgmr.msra.gmra.mxu1 %v271_v33 }
  0x58   : > { %348 = vmatmul.f32.gmra.mxu2 %v276_v34  ;;  %389 = vmatmul.f32.gmra.mxu3 %v276_v34 }
  0x5a   : > { %336 = vmatmul.f32.gmra.mxu0 %v272_v35  ;;  %377 = vmatmul.f32.gmra.mxu1 %v272_v35 }
  0x60   : > { %351 = vmatmul.f32.gmra.mxu2 %v277_v36  ;;  %392 = vmatmul.f32.gmra.mxu3 %v277_v36 }
  0x62   : > { %339 = vmatmul.f32.gmra.mxu0 %v273_v37  ;;  %380 = vmatmul.f32.gmra.mxu1 %v273_v37 }
  0x68   : > { %354 = vmatmul.f32.gmra.mxu2 %v278_v38  ;;  %395 = vmatmul.f32.gmra.mxu3 %v278_v38 }
  0x6a   : > { %342 = vmatmul.f32.gmra.mxu0 %v274_v39  ;;  %383 = vmatmul.f32.gmra.mxu1 %v274_v39 }
  0xcf   : > { %v334_v43 = vpop.f32.mrf.mxu0  ;;  %v375_v44 = vpop.f32.mrf.mxu1 }
  0xd0   : > { %v335_v45 = vadd.f32 %v334_v43, %v313_v41  ;;  %v376_v46 = vadd.f32 %v375_v44, %v314_v42 }
  0xd2   : > { %399 = vst [vmem:[%s1069_s20] sm:$0xff] %v335_v45 }
  0xd3   : > { %v346_v47 = vpop.f32.mrf.mxu2  ;;  %400 = vst [vmem:[%s1069_s20 + $0x8] sm:$0xff] %v376_v46  ;;  %v387_v48 = vpop.f32.mrf.mxu3 }
  0xd4   : > { %v347_v49 = vadd.f32 %v346_v47, %v313_v41  ;;  %v388_v50 = vadd.f32 %v387_v48, %v314_v42 }
  0xd6   : > { %407 = vst [vmem:[%s1069_s20 + $0x40] sm:$0xff] %v347_v49 }
  0xd7   : > { %408 = vst [vmem:[%s1069_s20 + $0x48] sm:$0xff] %v388_v50  ;;  %v337_v51 = vpop.f32.mrf.mxu0  ;;  %v378_v52 = vpop.f32.mrf.mxu1 }
  0xd8   : > { %v338_v53 = vadd.f32 %v337_v51, %v313_v41  ;;  %v379_v54 = vadd.f32 %v378_v52, %v314_v42 }
  0xda   : > { %401 = vst [vmem:[%s1069_s20 + $0x10] sm:$0xff] %v338_v53 }
  0xdb   : > { %v349_v55 = vpop.f32.mrf.mxu2  ;;  %402 = vst [vmem:[%s1069_s20 + $0x18] sm:$0xff] %v379_v54  ;;  %v390_v56 = vpop.f32.mrf.mxu3 }
  0xdc   : > { %v350_v57 = vadd.f32 %v349_v55, %v313_v41  ;;  %v391_v58 = vadd.f32 %v390_v56, %v314_v42 }
  0xde   : > { %409 = vst [vmem:[%s1069_s20 + $0x50] sm:$0xff] %v350_v57 }
  0xdf   : > { %410 = vst [vmem:[%s1069_s20 + $0x58] sm:$0xff] %v391_v58  ;;  %v340_v59 = vpop.f32.mrf.mxu0  ;;  %v381_v60 = vpop.f32.mrf.mxu1 }
  0xe0   : > { %v341_v61 = vadd.f32 %v340_v59, %v313_v41  ;;  %v382_v62 = vadd.f32 %v381_v60, %v314_v42 }
  0xe2   : > { %403 = vst [vmem:[%s1069_s20 + $0x20] sm:$0xff] %v341_v61 }
  0xe3   : > { %v352_v63 = vpop.f32.mrf.mxu2  ;;  %404 = vst [vmem:[%s1069_s20 + $0x28] sm:$0xff] %v382_v62  ;;  %v393_v0 = vpop.f32.mrf.mxu3 }
  0xe4   : > { %v353_v1 = vadd.f32 %v352_v63, %v313_v41  ;;  %v394_v2 = vadd.f32 %v393_v0, %v314_v42 }
  0xe6   : > { %411 = vst [vmem:[%s1069_s20 + $0x60] sm:$0xff] %v353_v1 }
  0xe7   : > { %412 = vst [vmem:[%s1069_s20 + $0x68] sm:$0xff] %v394_v2  ;;  %v343_v3 = vpop.f32.mrf.mxu0  ;;  %v384_v4 = vpop.f32.mrf.mxu1 }
  0xe8   : > { %v344_v5 = vadd.f32 %v343_v3, %v313_v41  ;;  %v385_v6 = vadd.f32 %v384_v4, %v314_v42 }
  0xea   : > { %405 = vst [vmem:[%s1069_s20 + $0x30] sm:$0xff] %v344_v5 }
  0xeb   : > { %v355_v7 = vpop.f32.mrf.mxu2  ;;  %406 = vst [vmem:[%s1069_s20 + $0x38] sm:$0xff] %v385_v6  ;;  %v396_v8 = vpop.f32.mrf.mxu3 }
  0xec   : > { %v356_v9 = vadd.f32 %v355_v7, %v313_v41  ;;  %v397_v10 = vadd.f32 %v396_v8, %v314_v42 }
  0xee   : > { %413 = vst [vmem:[%s1069_s20 + $0x70] sm:$0xff] %v356_v9 }
  0xef   : > { %414 = vst [vmem:[%s1069_s20 + $0x78] sm:$0xff] %v397_v10 }
  0xf0   : > { %809 = shalt.err (!%p806_p13)
}
  0xf1   : > { %s876_s29 = smov 256   ;;  %s877_s6 = smov 512  }
  0xf2   : > { %s878_s1 = smov 16  }
  0xf3   : > { %614 = dma.vmem_to_hbm [thread:$0]  (%p989_p0), %s432_s8, 2048, %s434_s9, %s416_s15, %s876_s29, %s877_s6, %s878_s1  }
  0xf4 PF: > { %s448_s7 = sand.u32 1, %s848_s12   ;;  %p628_p4 = pnand %p556_p3, %p993_p2 }
  0xf5   : > { %s449_s11 = scalar_lea.sflag [#allocation4], %s448_s7 }
  0xf6   : > { %p629_p5 = pneg %p628_p4 }
  0xf8   : > { %843 = dma.done.wait (%p629_p5), %s449_s11, 2048  }
  0xf9   : > { %845 = vsyncadd (%p629_p5), %s449_s11, 4294965248  ;;  %s20_s17 = sadd.s32 1, %s868_s17   ;;  %s1140_s12 = smov %s852_s13 }
  0xfa   : > { %p17_p1 = scmp.ge.s32.totalorder %s20_s17, 4   ;;  %s1141_s13 = smov %s856_s14 }
  0xfb   : > { %s1142_s14 = smov %s951_s25  ;;  %s1143_s15 = smov %s864_s16 }
  0xfc   : > { %s1144_s16 = smov %s1146_s18  ;;  %19 = sbr.rel (!%p17_p1) target bundleno = 10 (0xa), region = 94 }
 0x101   :  { %455 = vsyncpa [#allocation3], 1 }
 0x102   :  { %457 = vsyncpa [#allocation3 + $0x1], 1 }
 0x103   :  { %458 = vsyncpa [#allocation6], 1 }
 0x104   :  { %460 = vsyncpa [#allocation6 + $0x1], 1 }
 0x105   :  { %461 = vsyncpa [#allocation4], 1 }
 0x106   :  { %463 = vsyncpa [#allocation4 + $0x1], 1 }

</bundles_post_ra>
